<compile_context>
chip_gen: v7x
topology: tpu7x:2x2x1
jax: 0.10.0
libtpu: 0.0.40
codegen_flags: <defaults>
</compile_context>

<pallas_src>
import jax
import jax.numpy as jnp
from jax.experimental import pallas as pl
from jax.experimental.pallas import tpu as pltpu

CLAMP_LO = -100.0   # EncoderModule.output_clamp
CLAMP_HI = 100.0
LANE = 128


def _enc_head_reparam_kernel(h_ref, w_ref, b_ref, eps_ref, zmu_ref, zlv_ref, z_ref):
    # Single fused GEMM: [tb, H] @ [H, 2*E_pad]  (mu columns | logvar columns).
    # Operands stay in their native dtype (bf16 runs the MXU at full rate);
    # accumulation is forced to f32.
    acc = jnp.dot(h_ref[...], w_ref[...], preferred_element_type=jnp.float32)
    acc = acc + b_ref[...]                       # (1, 2*E_pad) bias broadcast

    e_pad = zmu_ref.shape[-1]                    # static, 128-lane aligned
    mu = jnp.clip(acc[:, :e_pad], CLAMP_LO, CLAMP_HI)
    lv = jnp.clip(acc[:, e_pad:], CLAMP_LO, CLAMP_HI)

    # Reparameterization fused in the matmul epilogue (mu/lv already resident).
    # stdev = exp(logvar) exactly as the PyTorch forward (z_logvar.exp()).
    z = mu + jnp.exp(lv) * eps_ref[...]

    zmu_ref[...] = mu.astype(zmu_ref.dtype)
    zlv_ref[...] = lv.astype(zlv_ref.dtype)
    z_ref[...] = z.astype(z_ref.dtype)


def _round_up(x, m):
    return (x + m - 1) // m * m


def _vmem_budget_bytes():
    """Conservative scoped-VMEM budget with headroom for compiler scratch."""
    try:
        cap = pltpu.get_tpu_info().vmem_capacity_bytes   # 128 MiB v5e/v6e, 64 MiB v7x
    except Exception:                                    # older jax / interpret fallback
        cap = 64 * 1024 * 1024
    return int(cap) * 3 // 4


def _pick_row_tile(H, e_pad, itemsize, budget):
    """Largest row tile whose double-buffered streams + resident weights fit VMEM."""
    resident = itemsize * (H * 2 * e_pad + 2 * e_pad)          # single-buffered W | b
    for tb in (1024, 512, 256, 128, 64, 32, 16, 8):
        streams = 2 * itemsize * tb * (H + 4 * e_pad)          # h, eps, 3 outputs (x2 buffers)
        if resident + streams <= budget:
            return tb
    return 8


def encoder_head_reparameterize(h, w_mu, b_mu, w_logvar, b_logvar, eps,
                                *, single_tile_max_rows=256):
    """Fused encoder head (dense_mu / dense_logvar, clamped) + reparameterization.

    h: [B, dim_h]; w_*: [dim_h, E]; b_*: [E]; eps: [B, E] ~ N(0, I).
    Returns (z_mu, z_logvar, z_sampled), each [B, E] with h's dtype.
    """
    B, H = h.shape
    E = w_mu.shape[1]
    assert w_mu.shape == (H, E) and w_logvar.shape == (H, E)
    assert b_mu.reshape(-1).shape == (E,) and b_logvar.reshape(-1).shape == (E,)
    assert eps.shape == (B, E)

    e_pad = _round_up(E, LANE)          # lane-dense outputs: full vst instead of vst.msk
    pad = e_pad - E

    def pad_cols(a):
        return jnp.pad(a, ((0, 0), (0, pad))) if pad else a

    # Fuse the two dense layers into one GEMM along the output dim.
    w_fused = jnp.concatenate([pad_cols(w_mu), pad_cols(w_logvar)], axis=1)      # [H, 2*E_pad]
    b_fused = jnp.concatenate([jnp.pad(b_mu.reshape(-1), (0, pad)),
                               jnp.pad(b_logvar.reshape(-1), (0, pad))]
                              ).reshape(1, 2 * e_pad)                            # [1, 2*E_pad]
    eps_p = pad_cols(eps)                                                        # [B, E_pad]

    out_dtype = h.dtype
    out_shape = tuple(jax.ShapeDtypeStruct((B, e_pad), out_dtype) for _ in range(3))

    itemsize = jnp.dtype(out_dtype).itemsize
    cost = pl.CostEstimate(
        flops=int(2 * B * H * 2 * e_pad + 8 * B * e_pad),
        transcendentals=int(B * e_pad),
        bytes_accessed=int(itemsize * (B * H + H * 2 * e_pad + 2 * e_pad
                                       + B * e_pad + 3 * B * e_pad)),
    )
    vmem_budget = _vmem_budget_bytes()

    if B <= single_tile_max_rows:
        # Single tile: no grid / index-map / pipeline scaffolding.
        zmu, zlv, z = pl.pallas_call(
            _enc_head_reparam_kernel,
            out_shape=out_shape,
            compiler_params=pltpu.CompilerParams(vmem_limit_bytes=vmem_budget),
            cost_estimate=cost,
        )(h, w_fused, b_fused, eps_p)
    else:
        tb = _pick_row_tile(H, e_pad, itemsize, vmem_budget)
        # Keep at least 2 row blocks so both v7x TensorCores get work.
        tb = max(8, min(tb, _round_up(pl.cdiv(B, 2), 8)))
        grid = (pl.cdiv(B, tb),)
        resident = dict(pipeline_mode=pl.Buffered(1))   # constant index_map -> no double buffer
        zmu, zlv, z = pl.pallas_call(
            _enc_head_reparam_kernel,
            out_shape=out_shape,
            grid=grid,
            in_specs=[
                pl.BlockSpec((tb, H), lambda i: (i, 0)),                      # h rows
                pl.BlockSpec((H, 2 * e_pad), lambda i: (0, 0), **resident),   # fused W (resident)
                pl.BlockSpec((1, 2 * e_pad), lambda i: (0, 0), **resident),   # fused b (resident)
                pl.BlockSpec((tb, e_pad), lambda i: (i, 0)),                  # eps rows
            ],
            out_specs=tuple(pl.BlockSpec((tb, e_pad), lambda i: (i, 0)) for _ in range(3)),
            compiler_params=pltpu.CompilerParams(
                dimension_semantics=("parallel",),
                vmem_limit_bytes=vmem_budget),
            cost_estimate=cost,
        )(h, w_fused, b_fused, eps_p)
        # TODO(synk): if dim_h ever grows so large that [H, 2*E_pad] (single-buffered)
        #   plus the [tb, H] block no longer fit VMEM, add a trailing "arbitrary" K grid
        #   axis with an f32 VMEM accumulator instead of shrinking the row tile.

    if pad:
        zmu, zlv, z = zmu[:, :E], zlv[:, :E], z[:, :E]
    return zmu, zlv, z


if __name__ == "__main__":
    key = jax.random.PRNGKey(0)
    k_h, k_wmu, k_wlv, k_bmu, k_blv, k_eps = jax.random.split(key, 6)

    # Small shapes consistent with the module's encoder head:
    # batch=8, dim_h=32, encoding_dim=16.
    B, DIM_H, ENC = 8, 32, 16

    h = jax.random.normal(k_h, (B, DIM_H), dtype=jnp.float32)             # encoder hidden
    w_mu = 0.1 * jax.random.normal(k_wmu, (DIM_H, ENC), dtype=jnp.float32)
    b_mu = 0.1 * jax.random.normal(k_bmu, (ENC,), dtype=jnp.float32)
    w_lv = 0.1 * jax.random.normal(k_wlv, (DIM_H, ENC), dtype=jnp.float32)
    b_lv = 0.1 * jax.random.normal(k_blv, (ENC,), dtype=jnp.float32)
    eps = jax.random.normal(k_eps, (B, ENC), dtype=jnp.float32)           # N(0, I) noise

    z_mu, z_logvar, z = encoder_head_reparameterize(h, w_mu, b_mu, w_lv, b_lv, eps)
    z = jax.block_until_ready(z)

    # Pure-JAX reference of the same forward slice of the module:
    # clamp(dense_mu), clamp(dense_logvar), z = mu + logvar.exp() * eps
    mu_ref = jnp.clip(h @ w_mu + b_mu, CLAMP_LO, CLAMP_HI)
    lv_ref = jnp.clip(h @ w_lv + b_lv, CLAMP_LO, CLAMP_HI)
    z_ref = mu_ref + jnp.exp(lv_ref) * eps

    assert z_mu.shape == (B, ENC) and z_logvar.shape == (B, ENC) and z.shape == (B, ENC)
    assert bool(jnp.all(jnp.isfinite(z)))
    assert jnp.allclose(z_mu, mu_ref, atol=1e-5, rtol=1e-5)
    assert jnp.allclose(z_logvar, lv_ref, atol=1e-5, rtol=1e-5)
    assert jnp.allclose(z, z_ref, atol=1e-4, rtol=1e-4)

    print("KERNEL_OK")
</pallas_src>

<mosaic_0001>
module attributes {stable_mosaic.version = 11 : i64} {
  func.func @_enc_head_reparam_kernel(%arg0: memref<8x32xf32, #tpu.memory_space<vmem>>, %arg1: memref<32x256xf32, #tpu.memory_space<vmem>>, %arg2: memref<1x256xf32, #tpu.memory_space<vmem>>, %arg3: memref<8x128xf32, #tpu.memory_space<vmem>>, %arg4: memref<8x128xf32, #tpu.memory_space<vmem>>, %arg5: memref<8x128xf32, #tpu.memory_space<vmem>>, %arg6: memref<8x128xf32, #tpu.memory_space<vmem>>) attributes {dimension_semantics = [], scalar_prefetch = 0 : i64, scratch_operands = 0 : i64, tpu.core_type = #tpu.core_type<tc>} {
    %c0 = arith.constant 0 : index
    %c0_0 = arith.constant 0 : index
    %0 = vector.load %arg0[%c0, %c0_0] : memref<8x32xf32, #tpu.memory_space<vmem>>, vector<8x32xf32>
    %c0_1 = arith.constant 0 : index
    %c0_2 = arith.constant 0 : index
    %1 = vector.load %arg1[%c0_1, %c0_2] : memref<32x256xf32, #tpu.memory_space<vmem>>, vector<32x256xf32>
    %cst = arith.constant dense<0.000000e+00> : vector<8x256xf32>
    %2 = tpu.matmul %0, %1, %cst {dimension_numbers = #tpu.dot_dimension_numbers<[1], [0], [0], [1], [0, 0, 1, 1], [], []>} : vector<8x32xf32>, vector<32x256xf32>, vector<8x256xf32> -> vector<8x256xf32>
    %c0_3 = arith.constant 0 : index
    %c0_4 = arith.constant 0 : index
    %3 = vector.load %arg2[%c0_3, %c0_4] : memref<1x256xf32, #tpu.memory_space<vmem>>, vector<1x256xf32>
    %4 = vector.broadcast %3 : vector<1x256xf32> to vector<8x256xf32>
    %5 = arith.addf %2, %4 : vector<8x256xf32>
    %6 = vector.extract_strided_slice %5 {offsets = [0, 0], sizes = [8, 128], strides = [1, 1]} : vector<8x256xf32> to vector<8x128xf32>
    %cst_5 = arith.constant -1.000000e+02 : f32
    %cst_6 = arith.constant 1.000000e+02 : f32
    %7 = vector.broadcast %cst_5 : f32 to vector<8x128xf32>
    %8 = arith.maximumf %7, %6 : vector<8x128xf32>
    %9 = vector.broadcast %cst_6 : f32 to vector<8x128xf32>
    %10 = arith.minimumf %9, %8 : vector<8x128xf32>
    %11 = vector.extract_strided_slice %5 {offsets = [0, 128], sizes = [8, 128], strides = [1, 1]} : vector<8x256xf32> to vector<8x128xf32>
    %cst_7 = arith.constant -1.000000e+02 : f32
    %cst_8 = arith.constant 1.000000e+02 : f32
    %12 = vector.broadcast %cst_7 : f32 to vector<8x128xf32>
    %13 = arith.maximumf %12, %11 : vector<8x128xf32>
    %14 = vector.broadcast %cst_8 : f32 to vector<8x128xf32>
    %15 = arith.minimumf %14, %13 : vector<8x128xf32>
    %16 = math.exp %15 : vector<8x128xf32>
    %c0_9 = arith.constant 0 : index
    %c0_10 = arith.constant 0 : index
    %17 = vector.load %arg3[%c0_9, %c0_10] : memref<8x128xf32, #tpu.memory_space<vmem>>, vector<8x128xf32>
    %18 = arith.mulf %16, %17 : vector<8x128xf32>
    %19 = arith.addf %10, %18 : vector<8x128xf32>
    %c0_11 = arith.constant 0 : index
    %c0_12 = arith.constant 0 : index
    %20 = vector.load %arg4[%c0_11, %c0_12] : memref<8x128xf32, #tpu.memory_space<vmem>>, vector<8x128xf32>
    tpu.vector_store %arg4[%c0_11, %c0_12], %10 {strides = array<i32>} : memref<8x128xf32, #tpu.memory_space<vmem>>, vector<8x128xf32>,
    %c0_13 = arith.constant 0 : index
    %c0_14 = arith.constant 0 : index
    %21 = vector.load %arg5[%c0_13, %c0_14] : memref<8x128xf32, #tpu.memory_space<vmem>>, vector<8x128xf32>
    tpu.vector_store %arg5[%c0_13, %c0_14], %15 {strides = array<i32>} : memref<8x128xf32, #tpu.memory_space<vmem>>, vector<8x128xf32>,
    %c0_15 = arith.constant 0 : index
    %c0_16 = arith.constant 0 : index
    %22 = vector.load %arg6[%c0_15, %c0_16] : memref<8x128xf32, #tpu.memory_space<vmem>>, vector<8x128xf32>
    tpu.vector_store %arg6[%c0_15, %c0_16], %19 {strides = array<i32>} : memref<8x128xf32, #tpu.memory_space<vmem>>, vector<8x128xf32>,
    return
  }
}

</mosaic_0001>

<bundles_post_ra>
// kernel: tpu_custom_call.1
= control target key start
LH: loop header
LB: loop body
LE: loop exit
PB: predicated region body
PF: predicated region fallthrough
CT: control target
= control target key end

     0   :  { %12 = vsyncpa [#allocation3], 0  ;;  %s461_s0 = inlined_call_operand.hbm [shape: f32[8,32], index: 0, kind: input, shape index: {}]   ;;  %s462_s1 = inlined_call_operand.hbm [shape: f32[32,256], index: 1, kind: input, shape index: {}]   ;;  %s463_s2 = inlined_call_operand.vmem [shape: f32[1,256], index: 2, kind: input, shape index: {}]   ;;  %s464_s3 = inlined_call_operand.vmem [shape: f32[8,128], index: 3, kind: input, shape index: {}]   ;;  %s465_s4 = inlined_call_operand.hbm [shape: f32[8,128], index: 4, kind: output, shape index: {0}]   ;;  %s466_s5 = inlined_call_operand.hbm [shape: f32[8,128], index: 5, kind: output, shape index: {1}]   ;;  %s467_s6 = inlined_call_operand.hbm [shape: f32[8,128], index: 6, kind: output, shape index: {2}]  }
   0x1   :  { %13 = vsyncpa [#allocation6], 0 }
   0x2   :  { %14 = vsyncpa [#allocation4], 0 }
   0x3   :  { %15 = vsyncpa [#allocation9], 0  ;;  %s338_s21 = smov [#allocation2]   ;;  %s339_s23 = smov [#allocation5]  }
   0x4   :  { %s22_s22 = sshll.u32 %s338_s21, 4  ;;  %s31_s24 = sshll.u32 %s339_s23, 4  ;;  %s23_s22 = int_to_ptr.vmem [resolvable:$true] %s22_s22  ;;  %s381_s24 = int_to_ptr.vmem [resolvable:$true] %s31_s24 }
   0x5   :  { %s220_s27 = scalar_lea.hbm %s461_s0, 128 }
   0x6   :  { %p221_p0 = scmp.ne.s32.totalorder %s461_s0, %s220_s27  ;;  %p224_p1 = scmp.lt.u32.totalorder %s220_s27, %s461_s0 }
   0x8   :  { %p226_p2 = pnand %p224_p1, %p221_p0 }
   0xa   :  { %229 = shalt.err (!%p226_p2)
}
   0xb   :  { %s230_s8 = scalar_lea.vmem %s23_s22, 128  ;;  %p235_p4 = scmp.lt.s32.totalorder %s23_s22, %s23_s22 }
   0xc   :  { %p231_p3 = scmp.ne.s32.totalorder %s23_s22, %s230_s8  ;;  %p236_p5 = scmp.lt.s32.totalorder %s230_s8, %s230_s8 }
   0xe   :  { %p237_p6 = por %p236_p5, %p235_p4 }
  0x10   :  { %p238_p7 = pnand %p237_p6, %p231_p3 }
  0x12   :  { %241 = shalt.err (!%p238_p7)
}
  0x13   :  { %25 = dma.hbm_to_vmem [thread:$0]  %s461_s0, 128, %s23_s22, [#allocation3]  }
  0x14   :  { %s242_s13 = scalar_lea.hbm %s462_s1, 1024 }
  0x15   :  { %p243_p8 = scmp.ne.s32.totalorder %s462_s1, %s242_s13  ;;  %p246_p9 = scmp.lt.u32.totalorder %s242_s13, %s462_s1 }
  0x17   :  { %p248_p10 = pnand %p246_p9, %p243_p8 }
  0x19   :  { %251 = shalt.err (!%p248_p10)
}
  0x1a   :  { %s252_s18 = scalar_lea.vmem %s381_s24, 1024  ;;  %p257_p12 = scmp.lt.s32.totalorder %s381_s24, %s381_s24 }
  0x1b   :  { %p253_p11 = scmp.ne.s32.totalorder %s381_s24, %s252_s18  ;;  %p258_p13 = scmp.lt.s32.totalorder %s252_s18, %s252_s18 }
  0x1d   :  { %p259_p0 = por %p258_p13, %p257_p12 }
  0x1f   :  { %p260_p1 = pnand %p259_p0, %p253_p11 }
  0x21   :  { %263 = shalt.err (!%p260_p1)
}
  0x22   :  { %s340_s0 = smov 256   ;;  %s341_s19 = smov 16  }
  0x23   :  { %37 = dma.hbm_to_vmem [thread:$0]  %s462_s1, 1024, %s381_s24, [#allocation6], %s340_s0, %s340_s0, %s341_s19  }
  0x24   :  { %330 = dma.done.wait [#allocation3], 128  }
  0x25   :  { %331 = vsyncadd [#allocation3], 4294967168 }
  0x26   :  { %332 = dma.done.wait [#allocation6], 1024  }
  0x27   :  { %333 = vsyncadd [#allocation6], 4294966272  ;;  %v342_v0 = vmov 0.0   ;;  %v50_v1 = vld [vmem:[#allocation5 + $0x8] sm:$0xff]  ;;  %v52_v2 = vld [vmem:[#allocation5 + $0x18] sm:$0xff]  ;;  %vm69_vm0 = vcmask 261120   ;;  %v59_v14 = vlaneseq }
  0x28   :  { %137 = vmatprep.mubr.f32.mxu0 %v342_v0  ;;  %v49_v3 = vld [vmem:[#allocation5] sm:$0xff]  ;;  %v202_v4 = vpack.c.bf16 %v52_v2, %v50_v1  ;;  %v51_v5 = vld [vmem:[#allocation5 + $0x10] sm:$0xff]  ;;  %v54_v6 = vld [vmem:[#allocation5 + $0x28] sm:$0xff]  ;;  %s343_s23 = smov [#allocation7]   ;;  %s344_s25 = smov [#allocation8]  }
  0x29   :  { %v56_v7 = vld [vmem:[#allocation5 + $0x38] sm:$0xff]  ;;  %v204_v8 = vpack.c.bf16 %v51_v5, %v49_v3  ;;  %v53_v10 = vld [vmem:[#allocation5 + $0x20] sm:$0xff]  ;;  %v55_v11 = vld [vmem:[#allocation5 + $0x30] sm:$0xff]  ;;  %v60_v15 = vshrl.u32 %v59_v14, 7  ;;  %s162_s24 = sshll.u32 %s343_s23, 4  ;;  %s172_s26 = sshll.u32 %s344_s25, 4  ;;  %s163_s24 = int_to_ptr.vmem [resolvable:$true] %s162_s24  ;;  %s415_s26 = int_to_ptr.vmem [resolvable:$true] %s172_s26 }
  0x2a   :  { %v206_v9 = vpack.c.bf16 %v56_v7, %v54_v6  ;;  %203 = vmatprep.subr.bf16.mxu0 %v202_v4  ;;  %v208_v12 = vpack.c.bf16 %v55_v11, %v53_v10  ;;  %v48_v13 = vld [vmem:[#allocation2] sm:$0xff]  ;;  %p269_p3 = scmp.lt.s32.totalorder %s163_s24, %s163_s24 }
  0x2b   :  { %205 = vmatpush1.bf16.msra.mxu0 %v204_v8  ;;  %v61_v16 = vsub.s32 0, %v60_v15  ;;  %v57_v17 = vld [vmem:[%s463_s2] sm:$0x3]  ;;  %v65_v18 = vsub.s32 1, %v60_v15  ;;  %s264_s2 = scalar_lea.vmem %s163_s24, 128 }
  0x2c   :  { %207 = vmatprep.subr.bf16.mxu0 %v206_v9  ;;  %p265_p2 = scmp.ne.s32.totalorder %s163_s24, %s264_s2  ;;  %p270_p4 = scmp.lt.s32.totalorder %s264_s2, %s264_s2 }
  0x2d   :  { %v62_v19 = vrot.slane %v57_v17, %v61_v16  ;;  %v66_v20 = vrot.slane %v57_v17, %v65_v18 }
  0x2e   :  { %p271_p5 = por %p270_p4, %p269_p3 }
  0x2f   :  { %209 = vmatpush1.bf16.msra.mxu0 %v208_v12 }
  0x30   :  { %p272_p6 = pnand %p271_p5, %p265_p2 }
  0x32   :  { %199 = vmatmul.mubr.msk.f32.vlgmr.msra.gmra.mrb[0].mxu0 %vm69_vm0, %v48_v13 }
 0x105   :  { %v139_v21 = vpop.f32.mrb[0].mxu0 }
 0x106   :  { %v140_v22 = vadd.f32 %v139_v21, %v62_v19  ;;  %v141_v23 = vpop.f32.mrb[1].mxu0 }
 0x107   :  { %v142_v24 = vadd.f32 %v141_v23, %v66_v20 }
 0x108   :  { %v200_v25 = vclamps-f32 %v140_v22, 100.0 }
 0x109   :  { %v201_v26 = vclamps-f32 %v142_v24, 100.0 }
 0x10a   :  { %153 = vst [vmem:[#allocation7] sm:$0xff] %v200_v25 }
 0x10b   :  { %v148_v27 = vmul.f32 1.442695, %v201_v26  ;;  %154 = vst [vmem:[#allocation8] sm:$0xff] %v201_v26 }
 0x10c   :  { %275 = shalt.err (!%p272_p6)
}
 0x10d   :  { %s276_s29 = scalar_lea.hbm %s465_s4, 128 }
 0x10e   :  { %p277_p7 = scmp.ne.s32.totalorder %s465_s4, %s276_s29  ;;  %p280_p8 = scmp.lt.u32.totalorder %s276_s29, %s465_s4 }
 0x110   :  { %p282_p9 = pnand %p280_p8, %p277_p7 }
 0x112   :  { %285 = shalt.err (!%p282_p9)
}
 0x113   :  { %165 = dma.vmem_to_hbm [thread:$0]  %s163_s24, 128, %s465_s4, [#allocation4]  }
 0x114   :  { %s286_s12 = scalar_lea.vmem %s415_s26, 128  ;;  %p291_p11 = scmp.lt.s32.totalorder %s415_s26, %s415_s26 }
 0x115   :  { %p287_p10 = scmp.ne.s32.totalorder %s415_s26, %s286_s12  ;;  %p292_p12 = scmp.lt.s32.totalorder %s286_s12, %s286_s12 }
 0x117   :  { %p293_p13 = por %p292_p12, %p291_p11 }
 0x119   :  { %p294_p0 = pnand %p293_p13, %p287_p10 }
 0x11b   :  { %297 = shalt.err (!%p294_p0)
}
 0x11c   :  { %s298_s15 = scalar_lea.hbm %s466_s5, 128 }
 0x11d   :  { %p299_p1 = scmp.ne.s32.totalorder %s466_s5, %s298_s15  ;;  %p302_p2 = scmp.lt.u32.totalorder %s298_s15, %s466_s5 }
 0x11f   :  { %p304_p3 = pnand %p302_p2, %p299_p1 }
 0x121   :  { %307 = shalt.err (!%p304_p3)
}
 0x122   :  { %175 = dma.vmem_to_hbm [thread:$0]  %s415_s26, 128, %s466_s5, [#allocation9]   ;;  %218 = vpow2.f32 %v148_v27  ;;  %v150_v28 = vld [vmem:[%s464_s3] sm:$0xff] }
 0x123   :  { %s345_s1 = smov [#allocation10]  }
 0x124   :  { %s182_s22 = sshll.u32 %s345_s1, 4  ;;  %s183_s22 = int_to_ptr.vmem [resolvable:$true] %s182_s22 }
 0x125   :  { %s308_s23 = scalar_lea.vmem %s183_s22, 128  ;;  %p313_p5 = scmp.lt.s32.totalorder %s183_s22, %s183_s22 }
 0x126   :  { %p309_p4 = scmp.ne.s32.totalorder %s183_s22, %s308_s23  ;;  %p314_p6 = scmp.lt.s32.totalorder %s308_s23, %s308_s23 }
 0x128   :  { %p315_p7 = por %p314_p6, %p313_p5 }
 0x12a   :  { %p316_p8 = pnand %p315_p7, %p309_p4 }
 0x12c   :  { %v219_v29 = vpop.eup %218 }
 0x12d   :  { %v151_v30 = vmul.f32 %v219_v29, %v150_v28 }
 0x12f   :  { %v152_v31 = vadd.f32 %v200_v25, %v151_v30 }
 0x131   :  { %155 = vst [vmem:[#allocation10] sm:$0xff] %v152_v31 }
 0x132   :  { %319 = shalt.err (!%p316_p8)
}
 0x133   :  { %s320_s25 = scalar_lea.hbm %s467_s6, 128 }
 0x134   :  { %p321_p9 = scmp.ne.s32.totalorder %s467_s6, %s320_s25  ;;  %p324_p10 = scmp.lt.u32.totalorder %s320_s25, %s467_s6 }
 0x136   :  { %p326_p11 = pnand %p324_p10, %p321_p9 }
 0x138   :  { %329 = shalt.err (!%p326_p11)
}
 0x139   :  { %185 = dma.vmem_to_hbm [thread:$0]  %s183_s22, 128, %s467_s6, [#allocation9]  }
 0x13a   :  { %334 = dma.done.wait [#allocation4], 128  }
 0x13b   :  { %335 = vsyncadd [#allocation4], 4294967168 }
 0x13c   :  { %336 = dma.done.wait [#allocation9], 256  }
 0x13d   :  { %337 = vsyncadd [#allocation9], 4294967040 }
 0x13e   :  { %195 = vsyncpa [#allocation3], 1 }
 0x13f   :  { %196 = vsyncpa [#allocation6], 1 }
 0x140   :  { %197 = vsyncpa [#allocation4], 1 }
 0x141   :  { %198 = vsyncpa [#allocation9], 1 }

</bundles_post_ra>
